<compile_context>
chip_gen: v6e
topology: v6e:2x2x1
jax: 0.10.0
libtpu: 0.0.40
codegen_flags: <defaults>
</compile_context>

<pallas_src>
import functools

import numpy as np
import jax
import jax.numpy as jnp
from jax.experimental import pallas as pl
from jax.experimental.pallas import tpu as pltpu


# ----------------------------------------------------------------- hardware-aware limits

def _vmem_budget_and_limit():
    """Per-grid-step working-set budget and Mosaic scoped-VMEM limit, per generation.
    Falls back to v7x-safe numbers (64 MiB VMEM per core) if the query is unavailable."""
    vmem_cap = 64 * 1024 * 1024
    try:
        cap = getattr(pltpu.get_tpu_info(), "vmem_capacity_bytes", None)
        if cap:
            vmem_cap = int(cap)
    except Exception:
        pass
    budget = min(vmem_cap // 3, 48 * 1024 * 1024)   # ~21 MiB on v7x, ~43-48 MiB on v5e/v6e
    limit = min(vmem_cap // 2, 96 * 1024 * 1024)
    return budget, limit


def _is_v5e():
    try:
        kind = jax.devices()[0].device_kind.lower()
        return ("v5e" in kind) or ("v5 lite" in kind) or ("v5litepod" in kind)
    except Exception:
        return False


# ----------------------------------------------------------------------------- helpers

def _nearest_indices(out_size, in_size):
    # PyTorch mode='nearest': src = floor(dst * in/out), exact integer math.
    dst = np.arange(out_size, dtype=np.int64)
    return np.clip((dst * in_size) // out_size, 0, in_size - 1)


def _one_hot_np(idx, depth):
    m = np.zeros((len(idx), depth), dtype=np.float32)
    m[np.arange(len(idx)), idx] = 1.0
    return m


@functools.lru_cache(maxsize=None)
def _w_selection(win, wout, dtype_str):
    # (Win, Wout) one-hot W selection, pre-transposed so the kernel needs no .T
    sw = _one_hot_np(_nearest_indices(wout, win), win)         # (Wout, Win)
    return jnp.asarray(sw.T, dtype=jnp.dtype(dtype_str))


@functools.lru_cache(maxsize=None)
def _kron_selection(hin, win, hout, wout, dtype_str):
    sh = _one_hot_np(_nearest_indices(hout, hin), hin)         # (Hout, Hin)
    sw = _one_hot_np(_nearest_indices(wout, win), win)         # (Wout, Win)
    return jnp.asarray(np.kron(sh.T, sw.T), dtype=jnp.dtype(dtype_str))


def _divisors_desc(n):
    return [d for d in range(n, 0, -1) if n % d == 0]


def _pick_block(B, need_fn, budget, sublane_mult, prefer_multi_step):
    """Largest divisor of B whose per-step VMEM need fits `budget`, preferring sublane
    alignment and (optionally) >=2 grid steps.  Never overshoots the budget."""
    divs = _divisors_desc(B)
    fits = [d for d in divs if need_fn(d) <= budget]
    if not fits:
        # TODO(synk): tile the spatial dims too when even a single-plane row block does
        # not fit the per-step budget (only relevant for extremely large planes).
        return divs[-1]                              # == 1
    aligned = [d for d in fits if d % sublane_mult == 0 or d == B]
    cands = aligned if aligned else fits
    if prefer_multi_step:
        multi = [d for d in cands if B // d >= 2]
        if multi:
            return multi[0]                          # largest fitting block with >=2 steps
    return cands[0]                                  # largest fitting block


# ----------------------------------------------------------------------------- kernels

def _fused_kernel(x_ref, sel_ref, o_ref):
    # x_ref: (Bb, Hin*Win)   sel_ref: (Hin*Win, Hout*Wout)   o_ref: (Bb, Hout*Wout)
    o_ref[...] = jnp.dot(
        x_ref[...].astype(sel_ref.dtype), sel_ref[...],
        preferred_element_type=jnp.float32,
    ).astype(o_ref.dtype)


def _row_resize_kernel(x_ref, swt_ref, o_ref):
    # H selection already happened at DMA time (the index_map gathered the source row).
    # x_ref: (Bb, Win)   swt_ref: (Win, Wout)   o_ref: (Bb, Wout)
    o_ref[...] = jnp.dot(
        x_ref[...].astype(swt_ref.dtype), swt_ref[...],
        preferred_element_type=jnp.float32,
    ).astype(o_ref.dtype)


# ----------------------------------------------------------------------------- wrapper

def resize_layer(x: jnp.ndarray, target_size) -> jnp.ndarray:
    """Nearest-neighbor resize of an NCHW tensor == F.interpolate(x, size=target_size)."""
    if isinstance(target_size, int):
        target_size = (target_size, target_size)
    N, C, Hin, Win = x.shape
    Hout, Wout = int(target_size[0]), int(target_size[1])
    B = N * C

    if (Hout, Wout) == (Hin, Win):
        return x                                      # nearest-resize to same size: identity

    xdt = jnp.dtype(x.dtype)
    # TODO(synk): int8/uint8 inputs could stay integer and use the int MXU on v5e/v6e;
    # int32/int64 values with |v| > 2^24 do not round-trip exactly through float32.
    if jnp.issubdtype(xdt, jnp.floating) and xdt.itemsize <= 4:
        cdtype = xdt
    else:
        cdtype = jnp.dtype(jnp.float32)
    xsz, csz = xdt.itemsize, jnp.dtype(cdtype).itemsize
    sublane_mult = max(8, 32 // max(1, xsz))          # 8 for f32, 16 for bf16, 32 for int8

    budget, vmem_limit = _vmem_budget_and_limit()

    # Fused-kron path only for genuinely tiny planes: it does 2*Hin*Win MACs per output
    # element vs 2*Win for the gather path; use a lower threshold on v5e's slower MXU.
    fused_cells_limit = 256 if _is_v5e() else 512
    use_fused = (Hin * Win <= fused_cells_limit
                 and (Hin * Win) * (Hout * Wout) * csz <= 1 * 1024 * 1024)

    if use_fused:
        # ---------- tiny-plane path: one lane-dense fused matmul --------------------------
        sel = _kron_selection(Hin, Win, Hout, Wout, str(jnp.dtype(cdtype)))
        x2 = x.reshape(B, Hin * Win)                  # free reshape

        def need_fused(d):
            return (2 * d * Hin * Win * xsz                    # input (double buffered)
                    + 2 * d * Hout * Wout * xsz                # output (double buffered)
                    + 2 * Hin * Win * Hout * Wout * csz        # kron sel (default x2 buffers)
                    + d * Hout * Wout * 4                      # f32 accumulator
                    + (d * Hin * Win * csz if cdtype != xdt else 0))

        b_blk = _pick_block(B, need_fused, budget, sublane_mult, prefer_multi_step=True)
        # TODO(synk): mark `sel` pipeline_mode=pl.Buffered(1) (grid-invariant) once the
        # single-buffer mode is confirmed on the target runtime; accounted as x2 above.
        out2 = pl.pallas_call(
            _fused_kernel,
            out_shape=jax.ShapeDtypeStruct((B, Hout * Wout), x.dtype),
            grid_spec=pltpu.PrefetchScalarGridSpec(
                num_scalar_prefetch=0,
                grid=(B // b_blk,),
                in_specs=[
                    pl.BlockSpec((b_blk, Hin * Win), lambda i: (i, 0)),
                    pl.BlockSpec((Hin * Win, Hout * Wout), lambda i: (0, 0)),
                ],
                out_specs=pl.BlockSpec((b_blk, Hout * Wout), lambda i: (i, 0)),
            ),
            compiler_params=pltpu.CompilerParams(
                dimension_semantics=("parallel",),
                vmem_limit_bytes=vmem_limit),
        )(x2, sel)
        return out2.reshape(N, C, Hout, Wout)

    # ---------- general path: DMA-time H row gather + single W matmul ---------------------
    # The squeezed H block dim's index map computes the nearest source row arithmetically;
    # (h*Hin)//Hout is always in [0, Hin), so it matches _nearest_indices exactly.
    swt = _w_selection(Win, Wout, str(jnp.dtype(cdtype)))       # (Win, Wout)
    x3 = x.reshape(B, Hin, Win)                                 # free reshape

    def need_rows(d):
        return (2 * d * Win * xsz                     # gathered input rows (double buffered)
                + 2 * d * Wout * xsz                  # output rows (double buffered)
                + 2 * Win * Wout * csz                # swt (default x2 buffers)
                + d * Wout * 4                        # f32 accumulator
                + (d * Win * csz if cdtype != xdt else 0))

    b_blk = _pick_block(B, need_rows, budget, sublane_mult,
                        prefer_multi_step=(Hout == 1))

    # TODO(synk): when Wout < 128, pack several output rows per grid step (lane-dense
    # stores) for cases where consecutive output rows share a contiguous input window.
    out3 = pl.pallas_call(
        _row_resize_kernel,
        out_shape=jax.ShapeDtypeStruct((B, Hout, Wout), x.dtype),
        grid_spec=pltpu.PrefetchScalarGridSpec(
            num_scalar_prefetch=0,
            grid=(B // b_blk, Hout),
            in_specs=[
                pl.BlockSpec((b_blk, pl.Squeezed(), Win),
                             lambda b, h: (b, (h * Hin) // Hout, 0)),
                pl.BlockSpec((Win, Wout), lambda b, h: (0, 0)),
            ],
            out_specs=pl.BlockSpec((b_blk, pl.Squeezed(), Wout),
                                   lambda b, h: (b, h, 0)),
        ),
        compiler_params=pltpu.CompilerParams(
            dimension_semantics=("parallel", "parallel"),
            vmem_limit_bytes=vmem_limit),
    )(x3, swt)
    return out3.reshape(N, C, Hout, Wout)


# ----------------------------------------------------------------------------- reference

def _reference_resize(x, target_size):
    if isinstance(target_size, int):
        target_size = (target_size, target_size)
    Hout, Wout = target_size
    ih = _nearest_indices(Hout, x.shape[2])
    iw = _nearest_indices(Wout, x.shape[3])
    return x[:, :, ih, :][:, :, :, iw]


if __name__ == "__main__":
    key = jax.random.PRNGKey(0)
    k0, k1 = jax.random.split(key)

    # Tiny-plane (fused) path: NCHW nearest resize, downsample H / upsample W.
    x = jax.random.normal(k0, (2, 4, 16, 16), dtype=jnp.float32)
    target = (8, 32)
    out = jax.block_until_ready(resize_layer(x, target))
    assert out.shape == (2, 4, 8, 32), out.shape
    assert jnp.array_equal(out, _reference_resize(x, target)), "fused path mismatch"

    # General path (DMA-time H row gather + W matmul), H down- and upsampling.
    x_big = jax.random.normal(k1, (2, 4, 32, 32), dtype=jnp.float32)
    for tgt in ((16, 48), (48, 16)):
        o = jax.block_until_ready(resize_layer(x_big, tgt))
        assert o.shape == (2, 4) + tgt, o.shape
        assert jnp.array_equal(o, _reference_resize(x_big, tgt)), f"gather path mismatch {tgt}"

    print("KERNEL_OK")
</pallas_src>

<mosaic_0001>
module attributes {stable_mosaic.version = 11 : i64} {
  func.func @_fused_kernel(%arg0: i32, %arg1: memref<8x256xf32, #tpu.memory_space<vmem>>, %arg2: memref<256x256xf32, #tpu.memory_space<vmem>>, %arg3: memref<8x256xf32, #tpu.memory_space<vmem>>) attributes {dimension_semantics = [#tpu.dimension_semantics<parallel>], iteration_bounds = array<i64: 1>, scalar_prefetch = 0 : i64, scratch_operands = 0 : i64, tpu.core_type = #tpu.core_type<tc>, window_params = [{transform_indices = @transform_0, window_bounds = array<i64: 8, 256>}, {pipeline_mode = #tpu.pipeline_mode<synchronous>, transform_indices = @transform_1, window_bounds = array<i64: 256, 256>}, {transform_indices = @transform_2, window_bounds = array<i64: 8, 256>}]} {
    %c0 = arith.constant 0 : index
    %c0_0 = arith.constant 0 : index
    %0 = vector.load %arg1[%c0, %c0_0] : memref<8x256xf32, #tpu.memory_space<vmem>>, vector<8x256xf32>
    %c0_1 = arith.constant 0 : index
    %c0_2 = arith.constant 0 : index
    %1 = vector.load %arg2[%c0_1, %c0_2] : memref<256x256xf32, #tpu.memory_space<vmem>>, vector<256x256xf32>
    %cst = arith.constant dense<0.000000e+00> : vector<8x256xf32>
    %2 = tpu.matmul %0, %1, %cst {dimension_numbers = #tpu.dot_dimension_numbers<[1], [0], [0], [1], [0, 0, 1, 1], [], []>} : vector<8x256xf32>, vector<256x256xf32>, vector<8x256xf32> -> vector<8x256xf32>
    %c0_3 = arith.constant 0 : index
    %c0_4 = arith.constant 0 : index
    %3 = vector.load %arg3[%c0_3, %c0_4] : memref<8x256xf32, #tpu.memory_space<vmem>>, vector<8x256xf32>
    tpu.vector_store %arg3[%c0_3, %c0_4], %2 {strides = array<i32>} : memref<8x256xf32, #tpu.memory_space<vmem>>, vector<8x256xf32>,
    return
  }
  func.func @transform_0(%arg0: i32) -> (i32, i32) {
    %c0_i32 = arith.constant 0 : i32
    %c0_i32_0 = arith.constant 0 : i32
    return %arg0, %c0_i32 : i32, i32
  }
  func.func @transform_1(%arg0: i32) -> (i32, i32) {
    %c0_i32 = arith.constant 0 : i32
    %c0_i32_0 = arith.constant 0 : i32
    %c0_i32_1 = arith.constant 0 : i32
    return %c0_i32, %c0_i32_0 : i32, i32
  }
  func.func @transform_2(%arg0: i32) -> (i32, i32) {
    %c0_i32 = arith.constant 0 : i32
    %c0_i32_0 = arith.constant 0 : i32
    return %arg0, %c0_i32 : i32, i32
  }
}

</mosaic_0001>

<bundles_post_ra>
// kernel: tpu_custom_call.1
= control target key start
LH: loop header
LB: loop body
LE: loop exit
PB: predicated region body
PF: predicated region fallthrough
CT: control target
= control target key end

     0   :  { %7 = vsyncpa [#allocation3], 0  ;;  %s293_s0 = inlined_call_operand.hbm [shape: f32[8,256], index: 0, kind: input, shape index: {}]   ;;  %s294_s1 = inlined_call_operand.hbm [shape: f32[256,256], index: 1, kind: input, shape index: {}]   ;;  %s295_s2 = inlined_call_operand.hbm [shape: f32[8,256], index: 2, kind: output, shape index: {}]  }
   0x1   :  { %8 = vsyncpa [#allocation6], 0 }
   0x2   :  { %9 = vsyncpa [#allocation4], 0  ;;  %s264_s9 = smov [#allocation2]   ;;  %s265_s11 = smov [#allocation5]  }
   0x3   :  { %s16_s10 = sshll.u32 %s264_s9, 4  ;;  %s25_s12 = sshll.u32 %s265_s11, 4  ;;  %s17_s10 = int_to_ptr.vmem [resolvable:$true] %s16_s10  ;;  %s26_s12 = int_to_ptr.vmem [resolvable:$true] %s25_s12 }
   0x4   :  { %s206_s13 = scalar_lea.vmem %s17_s10, 256  ;;  %p211_p1 = scmp.lt.s32.totalorder %s17_s10, %s17_s10 }
   0x5   :  { %p207_p0 = scmp.ne.s32.totalorder %s17_s10, %s206_s13  ;;  %p212_p2 = scmp.lt.s32.totalorder %s206_s13, %s206_s13 }
   0x7   :  { %p213_p3 = por %p212_p2, %p211_p1 }
   0x9   :  { %p214_p4 = pnand %p213_p3, %p207_p0 }
   0xb   :  { %217 = shalt.err (!%p214_p4)
}
   0xc   :  { %19 = dma.hbm_to_vmem [thread:$0]  %s293_s0, 256, %s17_s10, [#allocation3]  }
   0xd   :  { %s226_s16 = scalar_lea.vmem %s26_s12, 8192  ;;  %p231_p6 = scmp.lt.s32.totalorder %s26_s12, %s26_s12 }
   0xe   :  { %p227_p5 = scmp.ne.s32.totalorder %s26_s12, %s226_s16  ;;  %p232_p7 = scmp.lt.s32.totalorder %s226_s16, %s226_s16 }
  0x10   :  { %p233_p8 = por %p232_p7, %p231_p6 }
  0x12   :  { %p234_p9 = pnand %p233_p8, %p227_p5 }
  0x14   :  { %237 = shalt.err (!%p234_p9)
}
  0x15   :  { %s266_s17 = smov 256   ;;  %s267_s18 = smov 16  }
  0x16   :  { %31 = dma.hbm_to_vmem [thread:$0]  %s294_s1, 8192, %s26_s12, [#allocation6], %s266_s17, %s266_s17, %s267_s18  }
  0x17   :  { %258 = dma.done.wait [#allocation3], 256  }
  0x18   :  { %259 = vsyncadd [#allocation3], 4294967040 }
  0x19   :  { %260 = dma.done.wait [#allocation6], 8192  }
  0x1a   :  { %261 = vsyncadd [#allocation6], 4294959104  ;;  %v71_v0 = vld [vmem:[#allocation5 + $0xf8] sm:$0xff]  ;;  %v70_v1 = vld [vmem:[#allocation5 + $0xf0] sm:$0xff]  ;;  %s268_s0 = smov [#allocation7]  }
  0x1b   :  { %v69_v2 = vld [vmem:[#allocation5 + $0xe8] sm:$0xff]  ;;  %104 = vmatprep.subr.mxu0 %v71_v0  ;;  %v68_v3 = vld [vmem:[#allocation5 + $0xe0] sm:$0xff]  ;;  %v67_v4 = vld [vmem:[#allocation5 + $0xd8] sm:$0xff]  ;;  %s183_s1 = sshll.u32 %s268_s0, 4  ;;  %s184_s1 = int_to_ptr.vmem [resolvable:$true] %s183_s1 }
  0x1c   :  { %105 = vmatpush1.msra.mxu0 %v70_v1  ;;  %v66_v5 = vld [vmem:[#allocation5 + $0xd0] sm:$0xff]  ;;  %v65_v6 = vld [vmem:[#allocation5 + $0xc8] sm:$0xff]  ;;  %v64_v7 = vld [vmem:[#allocation5 + $0xc0] sm:$0xff]  ;;  %s238_s21 = scalar_lea.vmem %s184_s1, 256  ;;  %p243_p11 = scmp.lt.s32.totalorder %s184_s1, %s184_s1 }
  0x1d   :  { %106 = vmatprep.subr.mxu0 %v69_v2  ;;  %v63_v8 = vld [vmem:[#allocation5 + $0xb8] sm:$0xff]  ;;  %v62_v9 = vld [vmem:[#allocation5 + $0xb0] sm:$0xff]  ;;  %v61_v10 = vld [vmem:[#allocation5 + $0xa8] sm:$0xff]  ;;  %p239_p10 = scmp.ne.s32.totalorder %s184_s1, %s238_s21  ;;  %p244_p12 = scmp.lt.s32.totalorder %s238_s21, %s238_s21 }
  0x1e   :  { %107 = vmatpush1.msra.mxu0 %v68_v3  ;;  %v60_v11 = vld [vmem:[#allocation5 + $0xa0] sm:$0xff]  ;;  %v59_v12 = vld [vmem:[#allocation5 + $0x98] sm:$0xff]  ;;  %v58_v13 = vld [vmem:[#allocation5 + $0x90] sm:$0xff] }
  0x1f   :  { %108 = vmatprep.subr.mxu0 %v67_v4  ;;  %v57_v14 = vld [vmem:[#allocation5 + $0x88] sm:$0xff]  ;;  %v56_v15 = vld [vmem:[#allocation5 + $0x80] sm:$0xff]  ;;  %v55_v16 = vld [vmem:[#allocation5 + $0x78] sm:$0xff]  ;;  %p245_p13 = por %p244_p12, %p243_p11 }
  0x20   :  { %109 = vmatpush1.msra.mxu0 %v66_v5  ;;  %v54_v17 = vld [vmem:[#allocation5 + $0x70] sm:$0xff]  ;;  %v53_v18 = vld [vmem:[#allocation5 + $0x68] sm:$0xff]  ;;  %v52_v19 = vld [vmem:[#allocation5 + $0x60] sm:$0xff] }
  0x21   :  { %110 = vmatprep.subr.mxu0 %v65_v6  ;;  %v51_v20 = vld [vmem:[#allocation5 + $0x58] sm:$0xff]  ;;  %v50_v21 = vld [vmem:[#allocation5 + $0x50] sm:$0xff]  ;;  %v49_v22 = vld [vmem:[#allocation5 + $0x48] sm:$0xff]  ;;  %p246_p0 = pnand %p245_p13, %p239_p10 }
  0x22   :  { %111 = vmatpush1.msra.mxu0 %v64_v7  ;;  %v48_v23 = vld [vmem:[#allocation5 + $0x40] sm:$0xff]  ;;  %v39_v24 = vld [vmem:[#allocation2 + $0x8] sm:$0xff]  ;;  %v46_v26 = vld [vmem:[#allocation5 + $0x30] sm:$0xff] }
  0x23   :  { %112 = vmatprep.subr.mxu0 %v63_v8  ;;  %v47_v25 = vld [vmem:[#allocation5 + $0x38] sm:$0xff]  ;;  %168 = vmatprep.mubr.f32.mxu0 %v39_v24  ;;  %v45_v27 = vld [vmem:[#allocation5 + $0x28] sm:$0xff]  ;;  %v44_v28 = vld [vmem:[#allocation5 + $0x20] sm:$0xff] }
  0x24   :  { %113 = vmatpush1.msra.mxu0 %v62_v9  ;;  %v43_v29 = vld [vmem:[#allocation5 + $0x18] sm:$0xff]  ;;  %v42_v30 = vld [vmem:[#allocation5 + $0x10] sm:$0xff]  ;;  %v41_v31 = vld [vmem:[#allocation5 + $0x8] sm:$0xff] }
  0x25   :  { %114 = vmatprep.subr.mxu0 %v61_v10  ;;  %v40_v32 = vld [vmem:[#allocation5] sm:$0xff]  ;;  %v103_v33 = vld [vmem:[#allocation5 + $0x1f8] sm:$0xff]  ;;  %v102_v34 = vld [vmem:[#allocation5 + $0x1f0] sm:$0xff] }
  0x26   :  { %115 = vmatpush1.msra.mxu0 %v60_v11  ;;  %v101_v35 = vld [vmem:[#allocation5 + $0x1e8] sm:$0xff]  ;;  %v100_v36 = vld [vmem:[#allocation5 + $0x1e0] sm:$0xff]  ;;  %v99_v37 = vld [vmem:[#allocation5 + $0x1d8] sm:$0xff] }
  0x27   :  { %116 = vmatprep.subr.mxu0 %v59_v12  ;;  %v98_v38 = vld [vmem:[#allocation5 + $0x1d0] sm:$0xff]  ;;  %v97_v39 = vld [vmem:[#allocation5 + $0x1c8] sm:$0xff]  ;;  %v96_v40 = vld [vmem:[#allocation5 + $0x1c0] sm:$0xff] }
  0x28   :  { %117 = vmatpush1.msra.mxu0 %v58_v13  ;;  %v95_v41 = vld [vmem:[#allocation5 + $0x1b8] sm:$0xff]  ;;  %v94_v42 = vld [vmem:[#allocation5 + $0x1b0] sm:$0xff]  ;;  %v93_v43 = vld [vmem:[#allocation5 + $0x1a8] sm:$0xff] }
  0x29   :  { %118 = vmatprep.subr.mxu0 %v57_v14  ;;  %v92_v44 = vld [vmem:[#allocation5 + $0x1a0] sm:$0xff]  ;;  %v91_v45 = vld [vmem:[#allocation5 + $0x198] sm:$0xff]  ;;  %v90_v46 = vld [vmem:[#allocation5 + $0x190] sm:$0xff] }
  0x2a   :  { %119 = vmatpush1.msra.mxu0 %v56_v15  ;;  %v89_v47 = vld [vmem:[#allocation5 + $0x188] sm:$0xff]  ;;  %v88_v48 = vld [vmem:[#allocation5 + $0x180] sm:$0xff]  ;;  %v87_v49 = vld [vmem:[#allocation5 + $0x178] sm:$0xff] }
  0x2b   :  { %120 = vmatprep.subr.mxu0 %v55_v16  ;;  %v86_v50 = vld [vmem:[#allocation5 + $0x170] sm:$0xff]  ;;  %v85_v51 = vld [vmem:[#allocation5 + $0x168] sm:$0xff]  ;;  %v84_v52 = vld [vmem:[#allocation5 + $0x160] sm:$0xff] }
  0x2c   :  { %121 = vmatpush1.msra.mxu0 %v54_v17  ;;  %v83_v53 = vld [vmem:[#allocation5 + $0x158] sm:$0xff]  ;;  %v82_v54 = vld [vmem:[#allocation5 + $0x150] sm:$0xff]  ;;  %v81_v55 = vld [vmem:[#allocation5 + $0x148] sm:$0xff] }
  0x2d   :  { %122 = vmatprep.subr.mxu0 %v53_v18  ;;  %v80_v56 = vld [vmem:[#allocation5 + $0x140] sm:$0xff]  ;;  %v79_v57 = vld [vmem:[#allocation5 + $0x138] sm:$0xff]  ;;  %v78_v58 = vld [vmem:[#allocation5 + $0x130] sm:$0xff] }
  0x2e   :  { %123 = vmatpush1.msra.mxu0 %v52_v19  ;;  %v77_v59 = vld [vmem:[#allocation5 + $0x128] sm:$0xff]  ;;  %v76_v60 = vld [vmem:[#allocation5 + $0x120] sm:$0xff]  ;;  %v75_v61 = vld [vmem:[#allocation5 + $0x118] sm:$0xff] }
  0x2f   :  { %124 = vmatprep.subr.mxu0 %v51_v20  ;;  %v74_v62 = vld [vmem:[#allocation5 + $0x110] sm:$0xff]  ;;  %v73_v63 = vld [vmem:[#allocation5 + $0x108] sm:$0xff]  ;;  %v72_v0 = vld [vmem:[#allocation5 + $0x100] sm:$0xff] }
  0x30   :  { %125 = vmatpush1.msra.mxu0 %v50_v21  ;;  %v38_v1 = vld [vmem:[#allocation2] sm:$0xff] }
  0x31   :  { %126 = vmatprep.subr.mxu0 %v49_v22 }
  0x32   :  { %127 = vmatpush1.msra.mxu0 %v48_v23 }
  0x33   :  { %128 = vmatprep.subr.mxu0 %v47_v25 }
  0x34   :  { %129 = vmatpush1.msra.mxu0 %v46_v26 }
  0x35   :  { %130 = vmatprep.subr.mxu0 %v45_v27 }
  0x36   :  { %131 = vmatpush1.msra.mxu0 %v44_v28 }
  0x37   :  { %132 = vmatprep.subr.mxu0 %v43_v29 }
  0x38   :  { %133 = vmatpush1.msra.mxu0 %v42_v30 }
  0x39   :  { %134 = vmatprep.subr.mxu0 %v41_v31 }
  0x3a   :  { %135 = vmatpush1.msra.mxu0 %v40_v32 }
  0x3b   :  { %136 = vmatprep.subr.mxu0 %v103_v33 }
  0x3c   :  { %137 = vmatpush2.msra.mxu0 %v102_v34 }
  0x3d   :  { %138 = vmatprep.subr.mxu0 %v101_v35 }
  0x3e   :  { %139 = vmatpush2.msra.mxu0 %v100_v36 }
  0x3f   :  { %140 = vmatprep.subr.mxu0 %v99_v37 }
  0x40   :  { %141 = vmatpush2.msra.mxu0 %v98_v38 }
  0x41   :  { %142 = vmatprep.subr.mxu0 %v97_v39 }
  0x42   :  { %143 = vmatpush2.msra.mxu0 %v96_v40 }
  0x43   :  { %144 = vmatprep.subr.mxu0 %v95_v41 }
  0x44   :  { %145 = vmatpush2.msra.mxu0 %v94_v42 }
  0x45   :  { %146 = vmatprep.subr.mxu0 %v93_v43 }
  0x46   :  { %147 = vmatpush2.msra.mxu0 %v92_v44 }
  0x47   :  { %148 = vmatprep.subr.mxu0 %v91_v45 }
  0x48   :  { %149 = vmatpush2.msra.mxu0 %v90_v46 }
  0x49   :  { %150 = vmatprep.subr.mxu0 %v89_v47 }
  0x4a   :  { %151 = vmatpush2.msra.mxu0 %v88_v48 }
  0x4b   :  { %152 = vmatprep.subr.mxu0 %v87_v49 }
  0x4c   :  { %153 = vmatpush2.msra.mxu0 %v86_v50 }
  0x4d   :  { %154 = vmatprep.subr.mxu0 %v85_v51 }
  0x4e   :  { %155 = vmatpush2.msra.mxu0 %v84_v52 }
  0x4f   :  { %156 = vmatprep.subr.mxu0 %v83_v53 }
  0x50   :  { %157 = vmatpush2.msra.mxu0 %v82_v54 }
  0x51   :  { %158 = vmatprep.subr.mxu0 %v81_v55 }
  0x52   :  { %159 = vmatpush2.msra.mxu0 %v80_v56 }
  0x53   :  { %160 = vmatprep.subr.mxu0 %v79_v57 }
  0x54   :  { %161 = vmatpush2.msra.mxu0 %v78_v58 }
  0x55   :  { %162 = vmatprep.subr.mxu0 %v77_v59 }
  0x56   :  { %163 = vmatpush2.msra.mxu0 %v76_v60 }
  0x57   :  { %164 = vmatprep.subr.mxu0 %v75_v61 }
  0x58   :  { %165 = vmatpush2.msra.mxu0 %v74_v62 }
  0x59   :  { %166 = vmatprep.subr.mxu0 %v73_v63 }
  0x5a   :  { %167 = vmatpush2.msra.mxu0 %v72_v0 }
  0x5b   :  { %169 = vmatmul.mubr.f32.vlgmr.msra.gmra.mxu0 %v38_v1 }
 0x11b   :  { %v170_v2 = vpop.f32.mrf.mxu0 }
 0x11c   :  { %175 = vst [vmem:[#allocation7] sm:$0xff] %v170_v2 }
 0x11d   :  { %v172_v3 = vpop.f32.mrf.mxu0 }
 0x11e   :  { %176 = vst [vmem:[#allocation7 + $0x8] sm:$0xff] %v172_v3 }
 0x11f   :  { %249 = shalt.err (!%p246_p0)
}
 0x120   :  { %186 = dma.vmem_to_hbm [thread:$0]  %s184_s1, 256, %s295_s2, [#allocation4]  }
 0x121   :  { %262 = dma.done.wait [#allocation4], 256  }
 0x122   :  { %263 = vsyncadd [#allocation4], 4294967040 }
 0x123   :  { %190 = vsyncpa [#allocation3], 1 }
 0x124   :  { %191 = vsyncpa [#allocation6], 1 }
 0x125   :  { %192 = vsyncpa [#allocation4], 1 }

</bundles_post_ra>
